<compile_context>
chip_gen: v7x
topology: tpu7x:2x2x1
jax: 0.10.0
libtpu: 0.0.40
codegen_flags: <defaults>
</compile_context>

<pallas_src>
import jax
import jax.numpy as jnp
import numpy as np
from jax.experimental import pallas as pl
from jax.experimental.pallas import tpu as pltpu


# ---------------------------------------------------------------------------
# Fused FFN kernel: relu(x@W1+b1)@W2 + b2 + x  -> LayerNorm
# ---------------------------------------------------------------------------
def _ffn_kernel(x_ref, w1_ref, b1_ref, w2_ref, b2_ref, g_ref, beta_ref, o_ref):
    x = x_ref[...]                                            # (tm, d_in)
    # first projection + bias + relu (f32 accumulation on the MXU)
    h = jnp.dot(x, w1_ref[...], preferred_element_type=jnp.float32)
    h = jnp.maximum(h + b1_ref[...].astype(jnp.float32), 0.0)  # (tm, d_hid)
    # second projection (cast back to weight dtype so bf16 weights stay on the
    # fast MXU path), f32 accumulation
    y = jnp.dot(h.astype(w2_ref.dtype), w2_ref[...],
                preferred_element_type=jnp.float32)
    y = y + b2_ref[...].astype(jnp.float32) + x.astype(jnp.float32)  # residual
    # LayerNorm over the feature axis (kept full inside the block), eps = 1e-5
    mu = jnp.mean(y, axis=-1, keepdims=True)
    var = jnp.mean(jnp.square(y - mu), axis=-1, keepdims=True)
    yn = (y - mu) * jax.lax.rsqrt(var + 1e-5)
    o_ref[...] = (yn * g_ref[...].astype(jnp.float32)
                  + beta_ref[...].astype(jnp.float32)).astype(o_ref.dtype)


def _pick_row_tile(m, target):
    """Largest row tile <= target that divides m and is a multiple of 8."""
    if m <= target:
        return m
    for t in range(target, 7, -8):
        if m % t == 0:
            return t
    return m  # fall back to a single block


def positionwise_feed_forward(params, x, *, row_tile=256):
    """x: (B, L, d_in) -> (B, L, d_in)."""
    B, L, d_in = x.shape
    d_hid = params["w1"].shape[1]
    M = B * L
    tm = _pick_row_tile(M, row_tile)
    grid = (M // tm,)

    x2 = x.reshape(M, d_in)
    out = pl.pallas_call(
        _ffn_kernel,
        out_shape=jax.ShapeDtypeStruct((M, d_in), x.dtype),
        grid_spec=pltpu.PrefetchScalarGridSpec(
            num_scalar_prefetch=0,
            grid=grid,
            in_specs=[
                pl.BlockSpec((tm, d_in), lambda i: (i, 0)),      # x row tile
                pl.BlockSpec((d_in, d_hid), lambda i: (0, 0)),   # W1 (resident)
                pl.BlockSpec((1, d_hid), lambda i: (0, 0)),      # b1
                pl.BlockSpec((d_hid, d_in), lambda i: (0, 0)),   # W2 (resident)
                pl.BlockSpec((1, d_in), lambda i: (0, 0)),       # b2
                pl.BlockSpec((1, d_in), lambda i: (0, 0)),       # ln gamma
                pl.BlockSpec((1, d_in), lambda i: (0, 0)),       # ln beta
            ],
            out_specs=pl.BlockSpec((tm, d_in), lambda i: (i, 0)),
        ),
        compiler_params=pltpu.CompilerParams(
            dimension_semantics=("parallel",),       # megacore-shardable rows
            vmem_limit_bytes=48 * 1024 * 1024,       # headroom even on v7x (64 MiB)
        ),
    )(x2, params["w1"], params["b1"], params["w2"], params["b2"],
      params["ln_gamma"], params["ln_beta"])
    return out.reshape(B, L, d_in)


# ---------------------------------------------------------------------------
# Params + pure-numpy reference (for a correctness sanity check)
# ---------------------------------------------------------------------------
def init_params(key, d_in, d_hid, dtype=jnp.float32):
    k1, k2, k3, k4 = jax.random.split(key, 4)
    bound1 = 1.0 / float(np.sqrt(d_in))     # Conv1d default init bounds (fan_in)
    bound2 = 1.0 / float(np.sqrt(d_hid))
    return {
        "w1": jax.random.uniform(k1, (d_in, d_hid), dtype, -bound1, bound1),
        "b1": jax.random.uniform(k2, (1, d_hid), dtype, -bound1, bound1),
        "w2": jax.random.uniform(k3, (d_hid, d_in), dtype, -bound2, bound2),
        "b2": jax.random.uniform(k4, (1, d_in), dtype, -bound2, bound2),
        "ln_gamma": jnp.ones((1, d_in), dtype),
        "ln_beta": jnp.zeros((1, d_in), dtype),
    }


def _ffn_reference_np(params, x):
    """float64 numpy reference of the eval-mode forward."""
    xf = np.asarray(x, np.float64)
    w1 = np.asarray(params["w1"], np.float64)
    b1 = np.asarray(params["b1"], np.float64)[0]
    w2 = np.asarray(params["w2"], np.float64)
    b2 = np.asarray(params["b2"], np.float64)[0]
    g = np.asarray(params["ln_gamma"], np.float64)[0]
    bt = np.asarray(params["ln_beta"], np.float64)[0]
    h = np.maximum(xf @ w1 + b1, 0.0)
    y = h @ w2 + b2 + xf
    mu = y.mean(axis=-1, keepdims=True)
    var = ((y - mu) ** 2).mean(axis=-1, keepdims=True)
    return (y - mu) / np.sqrt(var + 1e-5) * g + bt


if __name__ == "__main__":
    key = jax.random.PRNGKey(0)
    # small but lane-dense shapes (feature dims multiples of 128)
    B, L, d_in, d_hid = 2, 64, 128, 256
    kp, kx = jax.random.split(key)
    params = init_params(kp, d_in, d_hid, jnp.float32)
    x = jax.random.normal(kx, (B, L, d_in), jnp.float32)

    # row_tile=64 -> grid=(2,) so the pipelined multi-step path is exercised
    out = positionwise_feed_forward(params, x, row_tile=64)
    jax.block_until_ready(out)
    assert out.shape == (B, L, d_in)

    ref = _ffn_reference_np(params, x)
    np.testing.assert_allclose(np.asarray(out, np.float64), ref,
                               atol=5e-2, rtol=5e-2)
    print("KERNEL_OK")
</pallas_src>

<mosaic_0001>
module attributes {stable_mosaic.version = 11 : i64} {
  func.func @_ffn_kernel(%arg0: i32, %arg1: memref<64x128xf32, #tpu.memory_space<vmem>>, %arg2: memref<128x256xf32, #tpu.memory_space<vmem>>, %arg3: memref<1x256xf32, #tpu.memory_space<vmem>>, %arg4: memref<256x128xf32, #tpu.memory_space<vmem>>, %arg5: memref<1x128xf32, #tpu.memory_space<vmem>>, %arg6: memref<1x128xf32, #tpu.memory_space<vmem>>, %arg7: memref<1x128xf32, #tpu.memory_space<vmem>>, %arg8: memref<64x128xf32, #tpu.memory_space<vmem>>) attributes {dimension_semantics = [#tpu.dimension_semantics<parallel>], iteration_bounds = array<i64: 2>, scalar_prefetch = 0 : i64, scratch_operands = 0 : i64, tpu.core_type = #tpu.core_type<tc>, window_params = [{transform_indices = @transform_0, window_bounds = array<i64: 64, 128>}, {pipeline_mode = #tpu.pipeline_mode<synchronous>, transform_indices = @transform_1, window_bounds = array<i64: 128, 256>}, {pipeline_mode = #tpu.pipeline_mode<synchronous>, transform_indices = @transform_2, window_bounds = array<i64: 1, 256>}, {pipeline_mode = #tpu.pipeline_mode<synchronous>, transform_indices = @transform_3, window_bounds = array<i64: 256, 128>}, {pipeline_mode = #tpu.pipeline_mode<synchronous>, transform_indices = @transform_4, window_bounds = array<i64: 1, 128>}, {pipeline_mode = #tpu.pipeline_mode<synchronous>, transform_indices = @transform_5, window_bounds = array<i64: 1, 128>}, {pipeline_mode = #tpu.pipeline_mode<synchronous>, transform_indices = @transform_6, window_bounds = array<i64: 1, 128>}, {transform_indices = @transform_7, window_bounds = array<i64: 64, 128>}]} {
    %c0 = arith.constant 0 : index
    %c0_0 = arith.constant 0 : index
    %0 = vector.load %arg1[%c0, %c0_0] : memref<64x128xf32, #tpu.memory_space<vmem>>, vector<64x128xf32>
    %c0_1 = arith.constant 0 : index
    %c0_2 = arith.constant 0 : index
    %1 = vector.load %arg2[%c0_1, %c0_2] : memref<128x256xf32, #tpu.memory_space<vmem>>, vector<128x256xf32>
    %cst = arith.constant dense<0.000000e+00> : vector<64x256xf32>
    %2 = tpu.matmul %0, %1, %cst {dimension_numbers = #tpu.dot_dimension_numbers<[1], [0], [0], [1], [0, 0, 1, 1], [], []>} : vector<64x128xf32>, vector<128x256xf32>, vector<64x256xf32> -> vector<64x256xf32>
    %c0_3 = arith.constant 0 : index
    %c0_4 = arith.constant 0 : index
    %3 = vector.load %arg3[%c0_3, %c0_4] : memref<1x256xf32, #tpu.memory_space<vmem>>, vector<1x256xf32>
    %4 = vector.broadcast %3 : vector<1x256xf32> to vector<64x256xf32>
    %5 = arith.addf %2, %4 : vector<64x256xf32>
    %cst_5 = arith.constant 0.000000e+00 : f32
    %6 = vector.broadcast %cst_5 : f32 to vector<64x256xf32>
    %7 = arith.maximumf %5, %6 : vector<64x256xf32>
    %c0_6 = arith.constant 0 : index
    %c0_7 = arith.constant 0 : index
    %8 = vector.load %arg4[%c0_6, %c0_7] : memref<256x128xf32, #tpu.memory_space<vmem>>, vector<256x128xf32>
    %cst_8 = arith.constant dense<0.000000e+00> : vector<64x128xf32>
    %9 = tpu.matmul %7, %8, %cst_8 {dimension_numbers = #tpu.dot_dimension_numbers<[1], [0], [0], [1], [0, 0, 1, 1], [], []>} : vector<64x256xf32>, vector<256x128xf32>, vector<64x128xf32> -> vector<64x128xf32>
    %c0_9 = arith.constant 0 : index
    %c0_10 = arith.constant 0 : index
    %10 = vector.load %arg5[%c0_9, %c0_10] : memref<1x128xf32, #tpu.memory_space<vmem>>, vector<1x128xf32>
    %11 = vector.broadcast %10 : vector<1x128xf32> to vector<64x128xf32>
    %12 = arith.addf %9, %11 : vector<64x128xf32>
    %13 = arith.addf %12, %0 : vector<64x128xf32>
    %cst_11 = arith.constant dense<0.000000e+00> : vector<64xf32>
    %14 = vector.multi_reduction <add>, %13, %cst_11 [1] : vector<64x128xf32> to vector<64xf32>
    %15 = vector.shape_cast %14 : vector<64xf32> to vector<64x1xf32>
    %cst_12 = arith.constant 1.280000e+02 : f32
    %16 = vector.broadcast %cst_12 : f32 to vector<64x1xf32>
    %17 = arith.divf %15, %16 : vector<64x1xf32>
    %18 = vector.broadcast %17 : vector<64x1xf32> to vector<64x128xf32>
    %19 = arith.subf %13, %18 : vector<64x128xf32>
    %20 = arith.mulf %19, %19 : vector<64x128xf32>
    %cst_13 = arith.constant dense<0.000000e+00> : vector<64xf32>
    %21 = vector.multi_reduction <add>, %20, %cst_13 [1] : vector<64x128xf32> to vector<64xf32>
    %22 = vector.shape_cast %21 : vector<64xf32> to vector<64x1xf32>
    %cst_14 = arith.constant 1.280000e+02 : f32
    %23 = vector.broadcast %cst_14 : f32 to vector<64x1xf32>
    %24 = arith.divf %22, %23 : vector<64x1xf32>
    %25 = vector.broadcast %17 : vector<64x1xf32> to vector<64x128xf32>
    %26 = arith.subf %13, %25 : vector<64x128xf32>
    %cst_15 = arith.constant 9.99999974E-6 : f32
    %27 = vector.broadcast %cst_15 : f32 to vector<64x1xf32>
    %28 = arith.addf %24, %27 : vector<64x1xf32>
    %29 = math.rsqrt %28 : vector<64x1xf32>
    %30 = vector.broadcast %29 : vector<64x1xf32> to vector<64x128xf32>
    %31 = arith.mulf %26, %30 : vector<64x128xf32>
    %c0_16 = arith.constant 0 : index
    %c0_17 = arith.constant 0 : index
    %32 = vector.load %arg6[%c0_16, %c0_17] : memref<1x128xf32, #tpu.memory_space<vmem>>, vector<1x128xf32>
    %33 = vector.broadcast %32 : vector<1x128xf32> to vector<64x128xf32>
    %34 = arith.mulf %31, %33 : vector<64x128xf32>
    %c0_18 = arith.constant 0 : index
    %c0_19 = arith.constant 0 : index
    %35 = vector.load %arg7[%c0_18, %c0_19] : memref<1x128xf32, #tpu.memory_space<vmem>>, vector<1x128xf32>
    %36 = vector.broadcast %35 : vector<1x128xf32> to vector<64x128xf32>
    %37 = arith.addf %34, %36 : vector<64x128xf32>
    %c0_20 = arith.constant 0 : index
    %c0_21 = arith.constant 0 : index
    %38 = vector.load %arg8[%c0_20, %c0_21] : memref<64x128xf32, #tpu.memory_space<vmem>>, vector<64x128xf32>
    tpu.vector_store %arg8[%c0_20, %c0_21], %37 {strides = array<i32>} : memref<64x128xf32, #tpu.memory_space<vmem>>, vector<64x128xf32>,
    return
  }
  func.func @transform_0(%arg0: i32) -> (i32, i32) {
    %c0_i32 = arith.constant 0 : i32
    %c0_i32_0 = arith.constant 0 : i32
    return %arg0, %c0_i32 : i32, i32
  }
  func.func @transform_1(%arg0: i32) -> (i32, i32) {
    %c0_i32 = arith.constant 0 : i32
    %c0_i32_0 = arith.constant 0 : i32
    %c0_i32_1 = arith.constant 0 : i32
    return %c0_i32, %c0_i32_0 : i32, i32
  }
  func.func @transform_2(%arg0: i32) -> (i32, i32) {
    %c0_i32 = arith.constant 0 : i32
    %c0_i32_0 = arith.constant 0 : i32
    %c0_i32_1 = arith.constant 0 : i32
    return %c0_i32, %c0_i32_0 : i32, i32
  }
  func.func @transform_3(%arg0: i32) -> (i32, i32) {
    %c0_i32 = arith.constant 0 : i32
    %c0_i32_0 = arith.constant 0 : i32
    %c0_i32_1 = arith.constant 0 : i32
    return %c0_i32, %c0_i32_0 : i32, i32
  }
  func.func @transform_4(%arg0: i32) -> (i32, i32) {
    %c0_i32 = arith.constant 0 : i32
    %c0_i32_0 = arith.constant 0 : i32
    %c0_i32_1 = arith.constant 0 : i32
    return %c0_i32, %c0_i32_0 : i32, i32
  }
  func.func @transform_5(%arg0: i32) -> (i32, i32) {
    %c0_i32 = arith.constant 0 : i32
    %c0_i32_0 = arith.constant 0 : i32
    %c0_i32_1 = arith.constant 0 : i32
    return %c0_i32, %c0_i32_0 : i32, i32
  }
  func.func @transform_6(%arg0: i32) -> (i32, i32) {
    %c0_i32 = arith.constant 0 : i32
    %c0_i32_0 = arith.constant 0 : i32
    %c0_i32_1 = arith.constant 0 : i32
    return %c0_i32, %c0_i32_0 : i32, i32
  }
  func.func @transform_7(%arg0: i32) -> (i32, i32) {
    %c0_i32 = arith.constant 0 : i32
    %c0_i32_0 = arith.constant 0 : i32
    return %arg0, %c0_i32 : i32, i32
  }
}

</mosaic_0001>

<bundles_post_ra>
// kernel: tpu_custom_call.1
= control target key start
LH: loop header
LB: loop body
LE: loop exit
PB: predicated region body
PF: predicated region fallthrough
CT: control target
= control target key end

     0   :  { %12 = vsyncpa [#allocation3], 0  ;;  %s1683_s0 = inlined_call_operand.hbm [shape: f32[128,128], index: 0, kind: input, shape index: {}]   ;;  %s1684_s1 = inlined_call_operand.hbm [shape: f32[128,256], index: 1, kind: input, shape index: {}]   ;;  %s1685_s2 = inlined_call_operand.vmem [shape: f32[1,256], index: 2, kind: input, shape index: {}]   ;;  %s1686_s3 = inlined_call_operand.hbm [shape: f32[256,128], index: 3, kind: input, shape index: {}]   ;;  %s1687_s4 = inlined_call_operand.vmem [shape: f32[1,128], index: 4, kind: input, shape index: {}]   ;;  %s1688_s5 = inlined_call_operand.vmem [shape: f32[1,128], index: 5, kind: input, shape index: {}]   ;;  %s1689_s6 = inlined_call_operand.vmem [shape: f32[1,128], index: 6, kind: input, shape index: {}]   ;;  %s1690_s7 = inlined_call_operand.hbm [shape: f32[128,128], index: 7, kind: output, shape index: {}]  }
   0x1   :  { %14 = vsyncpa [#allocation3 + $0x1], 0 }
   0x2   :  { %15 = vsyncpa [#allocation6], 0 }
   0x3   :  { %16 = vsyncpa [#allocation4], 0 }
   0x4   :  { %18 = vsyncpa [#allocation4 + $0x1], 0  ;;  %s1336_s24 = smov 0   ;;  %s1338_s25 = smov 0  }
   0x5   :  { %s1340_s26 = smov 0   ;;  %s1342_s27 = smov 0  }
   0x6 LB: > { %s1357_s28 = sadd.s32 4294967295, %s1283_s27   ;;  %s894_s29 = sadd.s32 4294967294, %s1283_s27   ;;  %s1283_s27 = sphi %s1342_s27, %s1712_s27   ;;  %s1279_s26 = sphi %s1340_s26, %s1711_s26   ;;  %s1275_s25 = sphi %s1338_s25, %s1710_s25   ;;  %s1271_s24 = sphi %s1336_s24, %s1709_s24  }
   0x7   : > { %p44_p0 = scmp.ne.s32.totalorder %s1275_s25, %s1271_s24  ;;  %p1691_p1 = scmp.eq.s32.totalorder %s1357_s28, 0 }
   0x8   : > { %p200_p3 = scmp.eq.s32.totalorder %s894_s29, 1  ;;  %p895_p5 = scmp.ge.s32.totalorder %s1283_s27, 1 }
   0x9   : > { %p1366_p4 = por %p1691_p1, %p44_p0  ;;  %p207_p7 = scmp.lt.s32.totalorder %s1283_s27, 3 }
   0xa   : > { %p1371_p6 = por %p200_p3, %p44_p0  ;;  %s1285_s10 = smov [#allocation5]  }
   0xb   : > { %s1695_s30 = scalar_select %p1366_p4, 1, 0 }
   0xc   : > { %s1696_s8 = scalar_select %p1371_p6, 1, 0 }
   0xd   : > { %p1376_p8 = pnand %p895_p5, %p207_p7  ;;  %s219_s11 = sshll.u32 %s1285_s10, 4  ;;  %s1380_s11 = int_to_ptr.vmem [resolvable:$true] %s219_s11 }
   0xe   : > { %s1286_s13 = smov [#allocation7]   ;;  %s1127_s17 = scalar_lea.hbm %s1684_s1, 4096 }
   0xf   : > { %p1049_p9 = pneg %p1376_p8  ;;  %s235_s14 = sshll.u32 %s1286_s13, 4  ;;  %s1391_s14 = int_to_ptr.vmem [resolvable:$true] %s235_s14 }
  0x10   : > { %p1128_p12 = scmp.ne.s32.totalorder %s1684_s1, %s1127_s17  ;;  %p1134_p5 = scmp.lt.u32.totalorder %s1127_s17, %s1684_s1 }
  0x11   : > { %p1387_p11 = pnand %p1049_p9, %p1691_p1 }
  0x13   : > { %p1129_p13 = pneg %p1387_p11 }
  0x15   : > { %p1130_p0 = pnand %p1129_p13, %p1128_p12 }
  0x17   : > { %p1131_p3 = pneg %p1130_p0 }
  0x19   : > { %p1136_p7 = pnand %p1134_p5, %p1131_p3 }
  0x1b   : > { %1139 = shalt.err (!%p1136_p7)
}
  0x1c   : > { %s1140_s22 = scalar_lea.vmem %s1380_s11, 4096  ;;  %p1148_p2 = scmp.lt.s32.totalorder %s1380_s11, %s1380_s11 }
  0x1d   : > { %p1141_p9 = scmp.ne.s32.totalorder %s1380_s11, %s1140_s22  ;;  %p1149_p12 = scmp.lt.s32.totalorder %s1140_s22, %s1140_s22 }
  0x1f   : > { %p1143_p10 = pnand %p1141_p9, %p1129_p13  ;;  %p1150_p0 = por %p1149_p12, %p1148_p2 }
  0x21   : > { %p1144_p1 = pneg %p1143_p10 }
  0x23   : > { %p1151_p6 = pnand %p1150_p0, %p1144_p1 }
  0x25   : > { %1154 = shalt.err (!%p1151_p6)
}
  0x26   : > { %s1287_s23 = smov 256   ;;  %s1288_s29 = smov 16  }
  0x27   : > { %1052 = dma.hbm_to_vmem [thread:$0]  (!%p1387_p11), %s1684_s1, 4096, %s1380_s11, [#allocation6], %s1287_s23, %s1287_s23, %s1288_s29  }
  0x28   : > { %s1155_s17 = scalar_lea.hbm %s1686_s3, 4096 }
  0x29   : > { %p1156_p2 = scmp.ne.s32.totalorder %s1686_s3, %s1155_s17  ;;  %p1162_p10 = scmp.lt.u32.totalorder %s1155_s17, %s1686_s3 }
  0x2b   : > { %p1158_p1 = pnand %p1156_p2, %p1129_p13 }
  0x2d   : > { %p1159_p6 = pneg %p1158_p1 }
  0x2f   : > { %p1164_p3 = pnand %p1162_p10, %p1159_p6 }
  0x31   : > { %1167 = shalt.err (!%p1164_p3)
}
  0x32   : > { %s1168_s11 = scalar_lea.vmem %s1391_s14, 4096  ;;  %p1176_p12 = scmp.lt.s32.totalorder %s1391_s14, %s1391_s14 }
  0x33   : > { %p1169_p5 = scmp.ne.s32.totalorder %s1391_s14, %s1168_s11  ;;  %p1177_p0 = scmp.lt.s32.totalorder %s1168_s11, %s1168_s11 }
  0x35   : > { %p1171_p7 = pnand %p1169_p5, %p1129_p13  ;;  %p1178_p2 = por %p1177_p0, %p1176_p12 }
  0x37   : > { %p1172_p9 = pneg %p1171_p7 }
  0x39   : > { %p1179_p1 = pnand %p1178_p2, %p1172_p9 }
  0x3b   : > { %1182 = shalt.err (!%p1179_p1)
}
  0x3c   : > { %s1692_s22 = smov 128   ;;  %s1290_s23 = smov 8  }
  0x3d   : > { %1055 = dma.hbm_to_vmem [thread:$0]  (!%p1387_p11), %s1686_s3, 4096, %s1391_s14, [#allocation6], %s1692_s22, %s1692_s22, %s1290_s23  }
  0x3e   : > { %s1449_s13 = sadd.s32 1, %s1283_s27   ;;  %s31_s16 = sadd.s32 1, %s1279_s26 }
  0x3f   : > { %s28_s15 = ssub.s32 %s1283_s27, %s1449_s13  ;;  %p38_p6 = scmp.ne.s32.totalorder %s1279_s26, %s1275_s25 }
  0x40   : > { %p29_p13 = scmp.eq.s32.totalorder %s28_s15, 0  ;;  %p39_p10 = scmp.eq.s32.totalorder %s1283_s27, 0 }
  0x41   : > { %p1699_p5 = scmp.eq.s32.totalorder %s1357_s28, 1  ;;  %p1066_p9 = scmp.lt.s32.totalorder %s1283_s27, 2 }
  0x42   : > { %s1458_s17 = scalar_select %p29_p13, %s1279_s26, %s31_s16  }
  0x43   : > { %p40_p3 = por %p39_p10, %p38_p6  ;;  %p1462_p7 = por %p1699_p5, %p38_p6 }
  0x44   : > { %s258_s18 = sand.u32 1, %s1279_s26   ;;  %s915_s14 = sshll.u32 %s1283_s27, 10 }
  0x45   : > { %s1700_s12 = scalar_select %p1462_p7, 1, 0 }
  0x46   : > { %s899_s19 = sshll.u32 %s258_s18, 6  ;;  %s1472_s11 = scalar_lea.hbm %s1683_s0, %s915_s14 }
  0x47   : > { %s262_s29 = scalar_lea.vmem [#allocation2], %s899_s19  ;;  %p1476_p11 = pnand %p1066_p9, %p40_p3 }
  0x48   : > { %s269_s10 = sshll.u32 %s262_s29, 4  ;;  %s1480_s16 = scalar_lea.sflag [#allocation3], %s258_s18  ;;  %s1474_s10 = int_to_ptr.vmem [resolvable:$true] %s269_s10 }
  0x49   : > { %s1183_s22 = scalar_lea.hbm %s1472_s11, 1024  ;;  %p1185_p0 = pneg %p1476_p11 }
  0x4a   : > { %p1184_p12 = scmp.ne.s32.totalorder %s1472_s11, %s1183_s22  ;;  %s1188_s20 = scalar_lea.hbm %s1683_s0, 2048 }
  0x4b   : > { %p1189_p13 = scmp.lt.u32.totalorder %s1472_s11, %s1683_s0  ;;  %p1190_p6 = scmp.lt.u32.totalorder %s1188_s20, %s1183_s22 }
  0x4c   : > { %p1186_p2 = pnand %p1185_p0, %p1184_p12  ;;  %p1192_p3 = scmp.lt.u32.totalorder %s1183_s22, %s1472_s11 }
  0x4d   : > { %p1191_p10 = por %p1190_p6, %p1189_p13 }
  0x4e   : > { %p1187_p1 = pneg %p1186_p2 }
  0x4f   : > { %p1193_p5 = por %p1192_p3, %p1191_p10 }
  0x51   : > { %p1194_p9 = pnand %p1193_p5, %p1187_p1 }
  0x53   : > { %1197 = shalt.err (!%p1194_p9)
}
  0x54   : > { %s1198_s18 = scalar_lea.vmem %s1474_s10, 1024  ;;  %s1291_s19 = smov [#allocation2]  }
  0x55   : > { %p1199_p12 = scmp.ne.s32.totalorder %s1474_s10, %s1198_s18  ;;  %s1203_s14 = sshll.u32 %s1291_s19, 4  ;;  %s1204_s14 = int_to_ptr.vmem [resolvable:$false] %s1203_s14 }
  0x56   : > { %s1205_s21 = scalar_lea.vmem %s1204_s14, 2048  ;;  %p1206_p4 = scmp.lt.s32.totalorder %s1474_s10, %s1204_s14 }
  0x57   : > { %p1201_p2 = pnand %p1199_p12, %p1185_p0  ;;  %p1207_p13 = scmp.lt.s32.totalorder %s1205_s21, %s1198_s18 }
  0x59   : > { %p1202_p7 = pneg %p1201_p2  ;;  %p1208_p6 = por %p1207_p13, %p1206_p4 }
  0x5b   : > { %p1209_p10 = pnand %p1208_p6, %p1202_p7 }
  0x5d   : > { %1212 = shalt.err (!%p1209_p10)
}
  0x5e   : > { %s1702_s22 = smov 128   ;;  %281 = sbr.rel (%p1376_p8) target bundleno = 931 (0x3a3), region = 48 }
  0x5f   : > { %1059 = dma.hbm_to_vmem [thread:$0]  (!%p1476_p11), %s1472_s11, 1024, %s1474_s10, %s1480_s16, %s1702_s22, %s1702_s22, %s1290_s23  }
  0x60   : > { %s1514_s20 = sand.u32 (!%p1376_p8), 1, %s1275_s25   ;;  %p1703_p4 = scmp.ne.s32.totalorder (!%p1376_p8), %s1695_s30, 0 }
  0x61   : > { %s903_s29 = sshll.u32 (!%p1376_p8), %s1514_s20, 6  ;;  %s284_s18 = scalar_lea.sflag (!%p1376_p8), [#allocation3], %s1514_s20 }
  0x62   : > { %s1520_s15 = scalar_lea.vmem (!%p1376_p8), [#allocation2], %s903_s29 }
  0x65   : > { %1258 = dma.done.wait (%p1703_p4), %s284_s18, 1024  }
  0x66   : > { %1260 = vsyncadd (%p1703_p4), %s284_s18, 4294966272  ;;  %p1704_p7 = scmp.eq.s32.totalorder %s1357_s28, 0 }
  0x68   : > { %1262 = dma.done.wait (%p1704_p7), [#allocation6], 8192   ;;  %p1705_p8 = pmov %p1704_p7 }
  0x69   : > { %v1292_v0 = vmov 0.0   ;;  %v337_v1 = vld [vmem:[#allocation5 + $0x8] sm:$0xff]  ;;  %v339_v2 = vld [vmem:[#allocation5 + $0x18] sm:$0xff]  ;;  %v336_v3 = vld [vmem:[#allocation5] sm:$0xff]  ;;  %s1616_s21 = scalar_lea.vmem [#allocation8], %s903_s29  ;;  %s916_s22 = sshll.u32 %s1357_s28, 10 }
  0x6a   : > { %1264 = vsyncadd (%p1705_p8), [#allocation6], 4294959104  ;;  %444 = vmatprep.mubr.f32.mxu0 %v1292_v0  ;;  %v973_v4 = vpack.c.bf16 %v339_v2, %v337_v1  ;;  %v338_v5 = vld [vmem:[#allocation5 + $0x10] sm:$0xff]  ;;  %v341_v6 = vld [vmem:[#allocation5 + $0x28] sm:$0xff]  ;;  %s802_s29 = sshll.u32 %s1616_s21, 4  ;;  %s1636_s30 = scalar_lea.hbm %s1690_s7, %s916_s22  ;;  %s1638_s29 = int_to_ptr.vmem [resolvable:$true] %s802_s29 }
  0x6b   : > { %v343_v7 = vld [vmem:[#allocation5 + $0x38] sm:$0xff]  ;;  %v975_v8 = vpack.c.bf16 %v338_v5, %v336_v3  ;;  %v340_v10 = vld [vmem:[#allocation5 + $0x20] sm:$0xff]  ;;  %v342_v11 = vld [vmem:[#allocation5 + $0x30] sm:$0xff]  ;;  %s789_s9 = scalar_lea.sflag [#allocation4], %s1514_s20  ;;  %s1213_s23 = scalar_lea.vmem %s1638_s29, 1024 }
  0x6c   : > { %v977_v9 = vpack.c.bf16 %v343_v7, %v341_v6  ;;  %v345_v12 = vld [vmem:[#allocation5 + $0x48] sm:$0xff]  ;;  %974 = vmatprep.subr.bf16.mxu0 %v973_v4  ;;  %v347_v13 = vld [vmem:[#allocation5 + $0x58] sm:$0xff]  ;;  %v979_v14 = vpack.c.bf16 %v342_v11, %v340_v10  ;;  %v344_v16 = vld [vmem:[#allocation5 + $0x40] sm:$0xff]  ;;  %p1214_p11 = scmp.ne.s32.totalorder %s1638_s29, %s1213_s23  ;;  %p1706_p0 = scmp.ne.s32.totalorder %s1700_s12, 0 }
  0x6d   : > { %976 = vmatpush1.bf16.msra.mxu0 %v975_v8  ;;  %v981_v15 = vpack.c.bf16 %v347_v13, %v345_v12  ;;  %v346_v17 = vld [vmem:[#allocation5 + $0x50] sm:$0xff]  ;;  %v349_v18 = vld [vmem:[#allocation5 + $0x68] sm:$0xff]  ;;  %v351_v19 = vld [vmem:[#allocation5 + $0x78] sm:$0xff]  ;;  %s1293_s28 = smov [#allocation8]  }
  0x6e   : > { %978 = vmatprep.subr.bf16.mxu0 %v977_v9  ;;  %v983_v20 = vpack.c.bf16 %v346_v17, %v344_v16  ;;  %v985_v21 = vpack.c.bf16 %v351_v19, %v349_v18  ;;  %v348_v22 = vld [vmem:[#allocation5 + $0x60] sm:$0xff]  ;;  %v350_v23 = vld [vmem:[#allocation5 + $0x70] sm:$0xff]  ;;  %v353_v24 = vld [vmem:[#allocation5 + $0x88] sm:$0xff]  ;;  %p1215_p1 = pnand %p1214_p11, %p1706_p0  ;;  %s1217_s11 = sshll.u32 %s1293_s28, 4  ;;  %s1218_s11 = int_to_ptr.vmem [resolvable:$false] %s1217_s11 }
  0x6f   : > { %v355_v25 = vld [vmem:[#allocation5 + $0x98] sm:$0xff]  ;;  %v987_v26 = vpack.c.bf16 %v350_v23, %v348_v22  ;;  %v352_v27 = vld [vmem:[#allocation5 + $0x80] sm:$0xff]  ;;  %v354_v28 = vld [vmem:[#allocation5 + $0x90] sm:$0xff]  ;;  %s1219_s10 = scalar_lea.vmem %s1218_s11, 2048  ;;  %p1220_p5 = scmp.lt.s32.totalorder %s1638_s29, %s1218_s11 }
  0x70   : > { %v357_v29 = vld [vmem:[#allocation5 + $0xa8] sm:$0xff]  ;;  %v989_v30 = vpack.c.bf16 %v355_v25, %v353_v24  ;;  %v359_v31 = vld [vmem:[#allocation5 + $0xb8] sm:$0xff]  ;;  %v525_v32 = vld [vmem:[#allocation7 + $0x80] sm:$0xff]  ;;  %v991_v42 = vpack.c.bf16 %v354_v28, %v352_v27  ;;  %p1216_p3 = pneg %p1215_p1  ;;  %p1221_p9 = scmp.lt.s32.totalorder %s1219_s10, %s1213_s23 }
  0x71   : > { %980 = vmatpush1.bf16.msra.mxu0 %v979_v14  ;;  %v526_v33 = vld [vmem:[#allocation7 + $0x88] sm:$0xff]  ;;  %v509_v35 = vld [vmem:[#allocation7] sm:$0xff]  ;;  %v527_v37 = vld [vmem:[#allocation7 + $0x90] sm:$0xff]  ;;  %v993_v46 = vpack.c.bf16 %v359_v31, %v357_v29 }
  0x72   : > { %982 = vmatprep.subr.bf16.mxu0 %v981_v15  ;;  %v1005_v34 = vpack.c.bf16 %v526_v33, %v525_v32  ;;  %v510_v36 = vld [vmem:[#allocation7 + $0x8] sm:$0xff]  ;;  %v528_v39 = vld [vmem:[#allocation7 + $0x98] sm:$0xff]  ;;  %v511_v40 = vld [vmem:[#allocation7 + $0x10] sm:$0xff]  ;;  %p1222_p12 = por %p1221_p9, %p1220_p5 }
  0x73   : > { %v1007_v38 = vpack.c.bf16 %v510_v36, %v509_v35  ;;  %v512_v41 = vld [vmem:[#allocation7 + $0x18] sm:$0xff]  ;;  %v1009_v43 = vpack.c.bf16 %v528_v39, %v527_v37  ;;  %v529_v44 = vld [vmem:[#allocation7 + $0xa0] sm:$0xff]  ;;  %v530_v45 = vld [vmem:[#allocation7 + $0xa8] sm:$0xff] }
  0x74   : > { %1006 = vmatprep.subr.bf16.mxu1 %v1005_v34  ;;  %v356_v47 = vld [vmem:[#allocation5 + $0xa0] sm:$0xff]  ;;  %v358_v48 = vld [vmem:[#allocation5 + $0xb0] sm:$0xff]  ;;  %v361_v49 = vld [vmem:[#allocation5 + $0xc8] sm:$0xff]  ;;  %v1011_v50 = vpack.c.bf16 %v512_v41, %v511_v40  ;;  %v1013_v52 = vpack.c.bf16 %v530_v45, %v529_v44  ;;  %p1223_p2 = pnand %p1222_p12, %p1216_p3 }
  0x75   : > { %984 = vmatpush1.bf16.msra.mxu0 %v983_v20  ;;  %1008 = vmatpush3.bf16.msra.mxu1 %v1007_v38  ;;  %v363_v51 = vld [vmem:[#allocation5 + $0xd8] sm:$0xff]  ;;  %v513_v53 = vld [vmem:[#allocation7 + $0x20] sm:$0xff]  ;;  %v514_v54 = vld [vmem:[#allocation7 + $0x28] sm:$0xff]  ;;  %v995_v57 = vpack.c.bf16 %v358_v48, %v356_v47 }
  0x76   : > { %986 = vmatprep.subr.bf16.mxu0 %v985_v21  ;;  %1010 = vmatprep.subr.bf16.mxu1 %v1009_v43  ;;  %v531_v55 = vld [vmem:[#allocation7 + $0xb0] sm:$0xff]  ;;  %v532_v56 = vld [vmem:[#allocation7 + $0xb8] sm:$0xff]  ;;  %v997_v58 = vpack.c.bf16 %v363_v51, %v361_v49  ;;  %v360_v59 = vld [vmem:[#allocation5 + $0xc0] sm:$0xff]  ;;  %v1015_v62 = vpack.c.bf16 %v514_v54, %v513_v53 }
  0x77   : > { %v362_v60 = vld [vmem:[#allocation5 + $0xd0] sm:$0xff]  ;;  %v365_v61 = vld [vmem:[#allocation5 + $0xe8] sm:$0xff]  ;;  %v367_v63 = vld [vmem:[#allocation5 + $0xf8] sm:$0xff]  ;;  %v1017_v1 = vpack.c.bf16 %v532_v56, %v531_v55 }
  0x78   : > { %v515_v2 = vld [vmem:[#allocation7 + $0x30] sm:$0xff]  ;;  %v516_v3 = vld [vmem:[#allocation7 + $0x38] sm:$0xff]  ;;  %v533_v4 = vld [vmem:[#allocation7 + $0xc0] sm:$0xff]  ;;  %v999_v6 = vpack.c.bf16 %v362_v60, %v360_v59  ;;  %v1001_v7 = vpack.c.bf16 %v367_v63, %v365_v61 }
  0x79   : > { %988 = vmatpush1.bf16.msra.mxu0 %v987_v26  ;;  %1012 = vmatpush3.bf16.msra.mxu1 %v1011_v50  ;;  %v534_v5 = vld [vmem:[#allocation7 + $0xc8] sm:$0xff]  ;;  %v364_v8 = vld [vmem:[#allocation5 + $0xe0] sm:$0xff]  ;;  %v366_v9 = vld [vmem:[#allocation5 + $0xf0] sm:$0xff]  ;;  %v1019_v10 = vpack.c.bf16 %v516_v3, %v515_v2 }
  0x7a   : > { %990 = vmatprep.subr.bf16.mxu0 %v989_v30  ;;  %1014 = vmatprep.subr.bf16.mxu1 %v1013_v52  ;;  %v1021_v11 = vpack.c.bf16 %v534_v5, %v533_v4  ;;  %v517_v12 = vld [vmem:[#allocation7 + $0x40] sm:$0xff]  ;;  %v518_v13 = vld [vmem:[#allocation7 + $0x48] sm:$0xff]  ;;  %v535_v14 = vld [vmem:[#allocation7 + $0xd0] sm:$0xff]  ;;  %v1003_v16 = vpack.c.bf16 %v366_v9, %v364_v8 }
  0x7b   : > { %v536_v15 = vld [vmem:[#allocation7 + $0xd8] sm:$0xff]  ;;  %v1023_v17 = vpack.c.bf16 %v518_v13, %v517_v12  ;;  %v519_v19 = vld [vmem:[#allocation7 + $0x50] sm:$0xff]  ;;  %v537_v21 = vld [vmem:[#allocation7 + $0xe0] sm:$0xff] }
  0x7c   : > { %v1025_v18 = vpack.c.bf16 %v536_v15, %v535_v14  ;;  %v520_v20 = vld [vmem:[#allocation7 + $0x58] sm:$0xff]  ;;  %v538_v22 = vld [vmem:[#allocation7 + $0xe8] sm:$0xff]  ;;  %v1532_v23 = vld [vmem:[%s1520_s15] sm:$0xff] }
  0x7d   : > { %992 = vmatpush1.bf16.msra.mxu0 %v991_v42  ;;  %1016 = vmatpush3.bf16.msra.mxu1 %v1015_v62  ;;  %v1027_v24 = vpack.c.bf16 %v520_v20, %v519_v19  ;;  %v1029_v25 = vpack.c.bf16 %v538_v22, %v537_v21  ;;  %v1537_v26 = vld [vmem:[%s1520_s15 + $0x8] sm:$0xff]  ;;  %v1542_v27 = vld [vmem:[%s1520_s15 + $0x10] sm:$0xff]  ;;  %v1547_v28 = vld [vmem:[%s1520_s15 + $0x18] sm:$0xff]  ;;  %v370_v42 = vlaneseq }
  0x7e   : > { %994 = vmatprep.subr.bf16.mxu0 %v993_v46  ;;  %1018 = vmatprep.subr.bf16.mxu1 %v1017_v1  ;;  %v1552_v29 = vld [vmem:[%s1520_s15 + $0x20] sm:$0xff]  ;;  %v1557_v30 = vld [vmem:[%s1520_s15 + $0x28] sm:$0xff]  ;;  %v1562_v31 = vld [vmem:[%s1520_s15 + $0x30] sm:$0xff] }
  0x7f   : > { %v1567_v32 = vld [vmem:[%s1520_s15 + $0x38] sm:$0xff]  ;;  %v521_v33 = vld [vmem:[#allocation7 + $0x60] sm:$0xff]  ;;  %v522_v34 = vld [vmem:[#allocation7 + $0x68] sm:$0xff]  ;;  %v371_v43 = vshrl.u32 %v370_v42, 7 }
  0x80   : > { %v1031_v35 = vpack.c.bf16 %v522_v34, %v521_v33  ;;  %v539_v36 = vld [vmem:[#allocation7 + $0xf0] sm:$0xff]  ;;  %v540_v37 = vld [vmem:[#allocation7 + $0xf8] sm:$0xff]  ;;  %v907_v42 = vld [vmem:[%s1687_s4] ss:$0 sm:$0xff] }
  0x81   : > { %996 = vmatpush1.bf16.msra.mxu0 %v995_v57  ;;  %1020 = vmatpush3.bf16.msra.mxu1 %v1019_v10  ;;  %v1033_v38 = vpack.c.bf16 %v540_v37, %v539_v36  ;;  %v523_v39 = vld [vmem:[#allocation7 + $0x70] sm:$0xff]  ;;  %v524_v40 = vld [vmem:[#allocation7 + $0x78] sm:$0xff]  ;;  %v372_v44 = vsub.s32 0, %v371_v43  ;;  %v376_v45 = vsub.s32 1, %v371_v43 }
  0x82   : > { %998 = vmatprep.subr.bf16.mxu0 %v997_v58  ;;  %1022 = vmatprep.subr.bf16.mxu1 %v1021_v11  ;;  %v1035_v41 = vpack.c.bf16 %v524_v40, %v523_v39 }
  0x85   : > { %1000 = vmatpush1.bf16.msra.mxu0 %v999_v6  ;;  %1024 = vmatpush3.bf16.msra.mxu1 %v1023_v17 }
  0x86   : > { %1002 = vmatprep.subr.bf16.mxu0 %v1001_v7  ;;  %1026 = vmatprep.subr.bf16.mxu1 %v1025_v18 }
  0x89   : > { %1004 = vmatpush1.bf16.msra.mxu0 %v1003_v16  ;;  %1028 = vmatpush3.bf16.msra.mxu1 %v1027_v24 }
  0x8a   : > { %1030 = vmatprep.subr.bf16.mxu1 %v1029_v25 }
  0x8c   : > { %445 = vmatmul.mubr.f32.vlgmr.msra.gmra.mrb[0].mxu0 %v1532_v23 }
  0x8d   : > { %450 = vmatprep.mubr.f32.mxu0 %v1292_v0  ;;  %1032 = vmatpush3.bf16.msra.mxu1 %v1031_v35 }
  0x8e   : > { %1034 = vmatprep.subr.bf16.mxu1 %v1033_v38 }
  0x90   : > { %451 = vmatmul.mubr.f32.gmra.mrb[2].mxu0 %v1537_v26 }
  0x91   : > { %456 = vmatprep.mubr.f32.mxu0 %v1292_v0  ;;  %1036 = vmatpush3.bf16.msra.mxu1 %v1035_v41 }
  0x94   : > { %457 = vmatmul.mubr.f32.gmra.mrb[4].mxu0 %v1542_v27 }
  0x95   : > { %462 = vmatprep.mubr.f32.mxu0 %v1292_v0 }
  0x98   : > { %463 = vmatmul.mubr.f32.gmra.mrb[6].mxu0 %v1547_v28 }
  0x99   : > { %468 = vmatprep.mubr.f32.mxu0 %v1292_v0 }
  0x9c   : > { %469 = vmatmul.mubr.f32.gmra.mrb[8].mxu0 %v1552_v29 }
  0x9d   : > { %474 = vmatprep.mubr.f32.mxu0 %v1292_v0 }
  0xa0   : > { %475 = vmatmul.mubr.f32.gmra.mrb[10].mxu0 %v1557_v30 }
  0xa1   : > { %480 = vmatprep.mubr.f32.mxu0 %v1292_v0 }
  0xa4   : > { %481 = vmatmul.mubr.f32.gmra.mrb[12].mxu0 %v1562_v31 }
  0xa5   : > { %486 = vmatprep.mubr.f32.mxu0 %v1292_v0  ;;  %v368_v0 = vld [vmem:[%s1685_s2] sm:$0x3] }
  0xa6   : > { %v373_v46 = vrot.slane %v368_v0, %v372_v44  ;;  %v377_v47 = vrot.slane %v368_v0, %v376_v45 }
  0xa8   : > { %487 = vmatmul.mubr.f32.gmra.mrb[14].mxu0 %v1567_v32 }
 0x15f   : > { %v446_v48 = vpop.f32.mrb[0].mxu0 }
 0x160   : > { %v447_v49 = vadd.f32 %v446_v48, %v373_v46  ;;  %v448_v50 = vpop.f32.mrb[1].mxu0 }
 0x161   : > { %v449_v51 = vadd.f32 %v448_v50, %v377_v47 }
 0x162   : > { %v493_v54 = vmax.f32 %v447_v49, 0.0 }
 0x163   : > { %v452_v52 = vpop.f32.mrb[2].mxu0  ;;  %v494_v53 = vmax.f32 %v449_v51, 0.0 }
 0x164   : > { %v453_v55 = vadd.f32 %v452_v52, %v373_v46  ;;  %v454_v56 = vpop.f32.mrb[3].mxu0 }
 0x165   : > { %v455_v57 = vadd.f32 %v454_v56, %v377_v47  ;;  %612 = vmatprep.mubr.f32.mxu1 %v494_v53 }
 0x166   : > { %613 = vmatmul.mubr.f32.vlgmr.msra.gmra.mrb[0].mxu1 %v493_v54  ;;  %v495_v60 = vmax.f32 %v453_v55, 0.0 }
 0x167   : > { %v496_v58 = vmax.f32 %v455_v57, 0.0  ;;  %v458_v59 = vpop.f32.mrb[4].mxu0 }
 0x168   : > { %v459_v61 = vadd.f32 %v458_v59, %v373_v46  ;;  %v460_v62 = vpop.f32.mrb[5].mxu0 }
 0x169   : > { %v461_v63 = vadd.f32 %v460_v62, %v377_v47  ;;  %617 = vmatprep.mubr.f32.mxu1 %v496_v58 }
 0x16a   : > { %618 = vmatmul.mubr.f32.gmra.mrb[2].mxu1 %v495_v60  ;;  %v497_v3 = vmax.f32 %v459_v61, 0.0 }
 0x16b   : > { %v498_v1 = vmax.f32 %v461_v63, 0.0  ;;  %v464_v2 = vpop.f32.mrb[6].mxu0 }
 0x16c   : > { %v465_v4 = vadd.f32 %v464_v2, %v373_v46  ;;  %v466_v5 = vpop.f32.mrb[7].mxu0 }
 0x16d   : > { %v467_v6 = vadd.f32 %v466_v5, %v377_v47  ;;  %622 = vmatprep.mubr.f32.mxu1 %v498_v1 }
 0x16e   : > { %623 = vmatmul.mubr.f32.gmra.mrb[4].mxu1 %v497_v3  ;;  %v499_v9 = vmax.f32 %v465_v4, 0.0 }
 0x16f   : > { %v500_v7 = vmax.f32 %v467_v6, 0.0  ;;  %v470_v8 = vpop.f32.mrb[8].mxu0 }
 0x170   : > { %v471_v10 = vadd.f32 %v470_v8, %v373_v46  ;;  %v472_v11 = vpop.f32.mrb[9].mxu0 }
 0x171   : > { %v473_v12 = vadd.f32 %v472_v11, %v377_v47  ;;  %627 = vmatprep.mubr.f32.mxu1 %v500_v7 }
 0x172   : > { %628 = vmatmul.mubr.f32.gmra.mrb[6].mxu1 %v499_v9  ;;  %v501_v15 = vmax.f32 %v471_v10, 0.0 }
 0x173   : > { %v502_v13 = vmax.f32 %v473_v12, 0.0  ;;  %v476_v14 = vpop.f32.mrb[10].mxu0 }
 0x174   : > { %v477_v16 = vadd.f32 %v476_v14, %v373_v46  ;;  %v478_v17 = vpop.f32.mrb[11].mxu0 }
 0x175   : > { %v479_v18 = vadd.f32 %v478_v17, %v377_v47  ;;  %632 = vmatprep.mubr.f32.mxu1 %v502_v13 }
 0x176   : > { %633 = vmatmul.mubr.f32.gmra.mrb[8].mxu1 %v501_v15  ;;  %v503_v21 = vmax.f32 %v477_v16, 0.0 }
 0x177   : > { %v504_v19 = vmax.f32 %v479_v18, 0.0  ;;  %v482_v20 = vpop.f32.mrb[12].mxu0 }
 0x178   : > { %v483_v22 = vadd.f32 %v482_v20, %v373_v46  ;;  %v484_v24 = vpop.f32.mrb[13].mxu0 }
 0x179   : > { %v485_v25 = vadd.f32 %v484_v24, %v377_v47  ;;  %637 = vmatprep.mubr.f32.mxu1 %v504_v19 }
 0x17a   : > { %638 = vmatmul.mubr.f32.gmra.mrb[10].mxu1 %v503_v21  ;;  %v505_v35 = vmax.f32 %v483_v22, 0.0 }
 0x17b   : > { %v506_v33 = vmax.f32 %v485_v25, 0.0  ;;  %v488_v34 = vpop.f32.mrb[14].mxu0 }
 0x17c   : > { %v489_v36 = vadd.f32 %v488_v34, %v373_v46  ;;  %v490_v37 = vpop.f32.mrb[15].mxu0 }
 0x17d   : > { %v491_v38 = vadd.f32 %v490_v37, %v377_v47  ;;  %642 = vmatprep.mubr.f32.mxu1 %v506_v33 }
 0x17e   : > { %643 = vmatmul.mubr.f32.gmra.mrb[12].mxu1 %v505_v35  ;;  %v507_v40 = vmax.f32 %v489_v36, 0.0 }
 0x17f   : > { %v508_v39 = vmax.f32 %v491_v38, 0.0 }
 0x181   : > { %647 = vmatprep.mubr.f32.mxu1 %v508_v39 }
 0x182   : > { %648 = vmatmul.mubr.f32.gmra.mrb[14].mxu1 %v507_v40 }
 0x239   : > { %v949_v41 = vpop.f32.mrb[0].mxu1 }
 0x23a   : > { %v950_v43 = vpop.f32.mrb[1].mxu1 }
 0x23b   : > { %v951_v44 = vadd.f32 %v950_v43, %v949_v41 }
 0x23d   : > { %v615_v0 = vadd.f32 %v951_v44, %v907_v42  ;;  %v952_v45 = vpop.f32.mrb[2].mxu1 }
 0x23e   : > { %v953_v48 = vpop.f32.mrb[3].mxu1 }
 0x23f   : > { %v954_v49 = vadd.f32 %v953_v48, %v952_v45  ;;  %v653_v46 = vadd.f32 %v615_v0, %v1532_v23 }
 0x241   : > { %v620_v47 = vadd.f32 %v954_v49, %v907_v42  ;;  %v955_v50 = vpop.f32.mrb[4].mxu1  ;;  %661 = vadd.xlane.f32.xlu0 %v653_v46 }
 0x242   : > { %v956_v51 = vpop.f32.mrb[5].mxu1 }
 0x243   : > { %v957_v52 = vadd.f32 %v956_v51, %v955_v50  ;;  %v654_v53 = vadd.f32 %v620_v47, %v1537_v26 }
 0x245   : > { %v625_v54 = vadd.f32 %v957_v52, %v907_v42  ;;  %v958_v55 = vpop.f32.mrb[6].mxu1  ;;  %663 = vadd.xlane.f32.xlu0 %v654_v53 }
 0x246   : > { %v959_v56 = vpop.f32.mrb[7].mxu1 }
 0x247   : > { %v960_v57 = vadd.f32 %v959_v56, %v958_v55  ;;  %v655_v58 = vadd.f32 %v625_v54, %v1542_v27 }
 0x249   : > { %v630_v59 = vadd.f32 %v960_v57, %v907_v42  ;;  %v961_v60 = vpop.f32.mrb[8].mxu1  ;;  %665 = vadd.xlane.f32.xlu1 %v655_v58 }
 0x24a   : > { %v962_v61 = vpop.f32.mrb[9].mxu1 }
 0x24b   : > { %v963_v62 = vadd.f32 %v962_v61, %v961_v60  ;;  %v656_v23 = vadd.f32 %v630_v59, %v1547_v28  ;;  %v908_v61 = vld [vmem:[%s1688_s5] ss:$0 sm:$0xff] }
 0x24d   : > { %v635_v63 = vadd.f32 %v963_v62, %v907_v42  ;;  %v964_v1 = vpop.f32.mrb[10].mxu1  ;;  %667 = vadd.xlane.f32.xlu1 %v656_v23 }
 0x24e   : > { %v965_v2 = vpop.f32.mrb[11].mxu1 }
 0x24f   : > { %v966_v3 = vadd.f32 %v965_v2, %v964_v1  ;;  %v657_v26 = vadd.f32 %v635_v63, %v1552_v29  ;;  %v909_v1 = vld [vmem:[%s1689_s6] ss:$0 sm:$0xff] }
 0x251   : > { %v640_v4 = vadd.f32 %v966_v3, %v907_v42  ;;  %v967_v5 = vpop.f32.mrb[12].mxu1  ;;  %669 = vadd.xlane.f32.xlu0 %v657_v26 }
 0x252   : > { %v968_v6 = vpop.f32.mrb[13].mxu1 }
 0x253   : > { %v969_v7 = vadd.f32 %v968_v6, %v967_v5  ;;  %v658_v27 = vadd.f32 %v640_v4, %v1557_v30 }
 0x255   : > { %v645_v8 = vadd.f32 %v969_v7, %v907_v42  ;;  %v970_v9 = vpop.f32.mrb[14].mxu1  ;;  %671 = vadd.xlane.f32.xlu1 %v658_v27 }
 0x256   : > { %v971_v10 = vpop.f32.mrb[15].mxu1 }
 0x257   : > { %v972_v11 = vadd.f32 %v971_v10, %v970_v9  ;;  %v659_v28 = vadd.f32 %v645_v8, %v1562_v31 }
 0x259   : > { %v650_v12 = vadd.f32 %v972_v11, %v907_v42  ;;  %673 = vadd.xlane.f32.xlu0 %v659_v28 }
 0x25b   : > { %v660_v13 = vadd.f32 %v650_v12, %v1567_v32 }
 0x25d   : > { %675 = vadd.xlane.f32.xlu1 %v660_v13 }
 0x2ce   : > { %v662_v29 = vpop.xlane.xlu0 %661 }
 0x2cf   : > { %v678_v14 = vmul.f32 0.0078125, %v662_v29 }
 0x2d1   : > { %v686_v15 = vsub.f32 %v653_v46, %v678_v14 }
 0x2d2   : > { %v664_v16 = vpop.xlane.xlu0 %663 }
 0x2d3   : > { %v679_v17 = vmul.f32 0.0078125, %v664_v16  ;;  %v694_v18 = vmul.f32 %v686_v15, %v686_v15 }
 0x2d5   : > { %v687_v19 = vsub.f32 %v654_v53, %v679_v17  ;;  %702 = vadd.xlane.f32.xlu0 %v694_v18 }
 0x2d6   : > { %v666_v30 = vpop.xlane.xlu1 %665 }
 0x2d7   : > { %v680_v20 = vmul.f32 0.0078125, %v666_v30  ;;  %v695_v21 = vmul.f32 %v687_v19, %v687_v19 }
 0x2d9   : > { %v1584_v22 = vsub.f32 %v655_v58, %v680_v20  ;;  %704 = vadd.xlane.f32.xlu1 %v695_v21 }
 0x2da   : > { %v668_v31 = vpop.xlane.xlu1 %667 }
 0x2db   : > { %v681_v24 = vmul.f32 0.0078125, %v668_v31  ;;  %v696_v32 = vmul.f32 %v1584_v22, %v1584_v22 }
 0x2dd   : > { %v1588_v25 = vsub.f32 %v656_v23, %v681_v24  ;;  %706 = vadd.xlane.f32.xlu0 %v696_v32 }
 0x2de   : > { %v670_v33 = vpop.xlane.xlu0 %669 }
 0x2df   : > { %v682_v34 = vmul.f32 0.0078125, %v670_v33  ;;  %v697_v35 = vmul.f32 %v1588_v25, %v1588_v25 }
 0x2e1   : > { %v1592_v36 = vsub.f32 %v657_v26, %v682_v34  ;;  %708 = vadd.xlane.f32.xlu1 %v697_v35 }
 0x2e2   : > { %v672_v37 = vpop.xlane.xlu1 %671 }
 0x2e3   : > { %v683_v38 = vmul.f32 0.0078125, %v672_v37  ;;  %v698_v39 = vmul.f32 %v1592_v36, %v1592_v36 }
 0x2e5   : > { %v1596_v40 = vsub.f32 %v658_v27, %v683_v38  ;;  %710 = vadd.xlane.f32.xlu0 %v698_v39 }
 0x2e6   : > { %v674_v41 = vpop.xlane.xlu0 %673 }
 0x2e7   : > { %v684_v42 = vmul.f32 0.0078125, %v674_v41  ;;  %v699_v43 = vmul.f32 %v1596_v40, %v1596_v40 }
 0x2e9   : > { %v1600_v44 = vsub.f32 %v659_v28, %v684_v42  ;;  %712 = vadd.xlane.f32.xlu1 %v699_v43 }
 0x2ea   : > { %v676_v0 = vpop.xlane.xlu1 %675 }
 0x2eb   : > { %v685_v45 = vmul.f32 0.0078125, %v676_v0  ;;  %v700_v48 = vmul.f32 %v1600_v44, %v1600_v44 }
 0x2ed   : > { %v1604_v49 = vsub.f32 %v660_v13, %v685_v45  ;;  %714 = vadd.xlane.f32.xlu0 %v700_v48 }
 0x2ef   : > { %v701_v46 = vmul.f32 %v1604_v49, %v1604_v49 }
 0x2f1   : > { %716 = vadd.xlane.f32.xlu1 %v701_v46 }
 0x362   : > { %v703_v47 = vpop.xlane.xlu0 %702 }
 0x363   : > { %v718_v50 = vmul.f32 0.0078125, %v703_v47 }
 0x365   : > { %v726_v51 = vadd.f32 1e-05, %v718_v50 }
 0x366   : > { %v705_v52 = vpop.xlane.xlu1 %704 }
 0x367   : > { %1111 = vrsqrt.f32 %v726_v51  ;;  %v719_v53 = vmul.f32 0.0078125, %v705_v52 }
 0x369   : > { %v727_v54 = vadd.f32 1e-05, %v719_v53 }
 0x36a   : > { %v707_v55 = vpop.xlane.xlu0 %706 }
 0x36b   : > { %1113 = vrsqrt.f32 %v727_v54  ;;  %v720_v56 = vmul.f32 0.0078125, %v707_v55 }
 0x36d   : > { %v728_v57 = vadd.f32 1e-05, %v720_v56 }
 0x36e   : > { %v709_v58 = vpop.xlane.xlu1 %708 }
 0x36f   : > { %1115 = vrsqrt.f32 %v728_v57  ;;  %v721_v59 = vmul.f32 0.0078125, %v709_v58 }
 0x371   : > { %v1112_v60 = vpop.eup %1111  ;;  %v729_v62 = vadd.f32 1e-05, %v721_v59 }
 0x372   : > { %v742_v23 = vmul.f32 %v1112_v60, %v686_v15  ;;  %v711_v63 = vpop.xlane.xlu0 %710 }
 0x373   : > { %1117 = vrsqrt.f32 %v729_v62  ;;  %v722_v2 = vmul.f32 0.0078125, %v711_v63 }
 0x374   : > { %v757_v3 = vmul.f32 %v908_v61, %v742_v23 }
 0x375   : > { %v1114_v26 = vpop.eup %1113  ;;  %v730_v4 = vadd.f32 1e-05, %v722_v2 }
 0x376   : > { %v772_v5 = vadd.f32 %v909_v1, %v757_v3  ;;  %v743_v6 = vmul.f32 %v1114_v26, %v687_v19  ;;  %v713_v7 = vpop.xlane.xlu1 %712 }
 0x377   : > { %1119 = vrsqrt.f32 %v730_v4  ;;  %v723_v27 = vmul.f32 0.0078125, %v713_v7 }
 0x378   : > { %780 = vst [vmem:[%s1616_s21] sm:$0xff] %v772_v5  ;;  %v758_v8 = vmul.f32 %v908_v61, %v743_v6 }
 0x379   : > { %v1116_v9 = vpop.eup %1115  ;;  %v731_v10 = vadd.f32 1e-05, %v723_v27 }
 0x37a   : > { %v773_v11 = vadd.f32 %v909_v1, %v758_v8  ;;  %v744_v28 = vmul.f32 %v1116_v9, %v1584_v22  ;;  %v715_v12 = vpop.xlane.xlu0 %714 }
 0x37b   : > { %1121 = vrsqrt.f32 %v731_v10  ;;  %v724_v13 = vmul.f32 0.0078125, %v715_v12 }
 0x37c   : > { %781 = vst [vmem:[%s1616_s21 + $0x8] sm:$0xff] %v773_v11  ;;  %v759_v29 = vmul.f32 %v908_v61, %v744_v28 }
 0x37d   : > { %v1118_v14 = vpop.eup %1117  ;;  %v732_v15 = vadd.f32 1e-05, %v724_v13 }
 0x37e   : > { %v774_v16 = vadd.f32 %v909_v1, %v759_v29  ;;  %v745_v17 = vmul.f32 %v1118_v14, %v1588_v25  ;;  %v717_v18 = vpop.xlane.xlu1 %716 }
 0x37f   : > { %1123 = vrsqrt.f32 %v732_v15  ;;  %v725_v19 = vmul.f32 0.0078125, %v717_v18 }
 0x380   : > { %782 = vst [vmem:[%s1616_s21 + $0x10] sm:$0xff] %v774_v16  ;;  %v760_v30 = vmul.f32 %v908_v61, %v745_v17 }
 0x381   : > { %v1120_v20 = vpop.eup %1119  ;;  %v733_v21 = vadd.f32 1e-05, %v725_v19 }
 0x382   : > { %v775_v22 = vadd.f32 %v909_v1, %v760_v30  ;;  %v746_v31 = vmul.f32 %v1120_v20, %v1592_v36 }
 0x383   : > { %1125 = vrsqrt.f32 %v733_v21 }
 0x384   : > { %783 = vst [vmem:[%s1616_s21 + $0x18] sm:$0xff] %v775_v22  ;;  %v761_v24 = vmul.f32 %v908_v61, %v746_v31 }
 0x385   : > { %v1122_v32 = vpop.eup %1121 }
 0x386   : > { %v776_v25 = vadd.f32 %v909_v1, %v761_v24  ;;  %v747_v33 = vmul.f32 %v1122_v32, %v1596_v40 }
 0x388   : > { %784 = vst [vmem:[%s1616_s21 + $0x20] sm:$0xff] %v776_v25  ;;  %v762_v34 = vmul.f32 %v908_v61, %v747_v33 }
 0x389   : > { %v1124_v35 = vpop.eup %1123 }
 0x38a   : > { %v777_v37 = vadd.f32 %v909_v1, %v762_v34  ;;  %v748_v38 = vmul.f32 %v1124_v35, %v1600_v44 }
 0x38c   : > { %785 = vst [vmem:[%s1616_s21 + $0x28] sm:$0xff] %v777_v37  ;;  %v763_v36 = vmul.f32 %v908_v61, %v748_v38 }
 0x38d   : > { %v1126_v39 = vpop.eup %1125 }
 0x38e   : > { %v778_v41 = vadd.f32 %v909_v1, %v763_v36  ;;  %v749_v42 = vmul.f32 %v1126_v39, %v1604_v49 }
 0x390   : > { %786 = vst [vmem:[%s1616_s21 + $0x30] sm:$0xff] %v778_v41  ;;  %v764_v43 = vmul.f32 %v908_v61, %v749_v42 }
 0x392   : > { %v779_v40 = vadd.f32 %v909_v1, %v764_v43 }
 0x394   : > { %787 = vst [vmem:[%s1616_s21 + $0x38] sm:$0xff] %v779_v40 }
 0x395   : > { %1226 = shalt.err (!%p1223_p2)
}
 0x396   : > { %s1227_s16 = scalar_lea.hbm %s1636_s30, 1024  ;;  %s1231_s21 = scalar_lea.hbm %s1690_s7, 2048 }
 0x397   : > { %p1228_p13 = scmp.ne.s32.totalorder %s1636_s30, %s1227_s16  ;;  %p1232_p4 = scmp.lt.u32.totalorder %s1636_s30, %s1690_s7 }
 0x398   : > { %p1233_p7 = scmp.lt.u32.totalorder %s1231_s21, %s1227_s16  ;;  %p1235_p11 = scmp.lt.u32.totalorder %s1227_s16, %s1636_s30 }
 0x399   : > { %p1229_p6 = pnand %p1228_p13, %p1706_p0 }
 0x39a   : > { %p1234_p8 = por %p1233_p7, %p1232_p4 }
 0x39b   : > { %p1230_p10 = pneg %p1229_p6 }
 0x39c   : > { %p1236_p1 = por %p1235_p11, %p1234_p8 }
 0x39e   : > { %p1237_p3 = pnand %p1236_p1, %p1230_p10 }
 0x3a0   : > { %1240 = shalt.err (!%p1237_p3)
}
 0x3a1   : > { %s1294_s15 = smov 128   ;;  %s1295_s23 = smov 8  }
 0x3a2   : > { %1047 = dma.vmem_to_hbm [thread:$0]  (%p1706_p0), %s1638_s29, 1024, %s1636_s30, %s789_s9, %s1294_s15, %s1294_s15, %s1295_s23  }
 0x3a3 PF: > { %s817_s28 = sand.u32 1, %s1271_s24   ;;  %p1707_p5 = scmp.ne.s32.totalorder %s1696_s8, 0 }
 0x3a4   : > { %p1708_p9 = scmp.ge.s32.totalorder %s1283_s27, 2  ;;  %s818_s11 = scalar_lea.sflag [#allocation4], %s817_s28 }
 0x3a6   : > { %p1061_p12 = pnand %p1708_p9, %p1707_p5 }
 0x3a8   : > { %1266 = dma.done.wait (!%p1061_p12), %s818_s11, 1024  }
 0x3a9   : > { %1268 = vsyncadd (!%p1061_p12), %s818_s11, 4294966272  ;;  %p21_p2 = scmp.ge.s32.totalorder %s1449_s13, 4   ;;  %s1709_s24 = smov %s1275_s25 }
 0x3aa   : > { %s1710_s25 = smov %s1279_s26  ;;  %s1711_s26 = smov %s1458_s17 }
 0x3ab   : > { %s1712_s27 = smov %s1449_s13  ;;  %23 = sbr.rel (!%p21_p2) target bundleno = 6 (0x6), region = 101 }
 0x3b2   :  { %823 = vsyncpa [#allocation3], 1 }
 0x3b3   :  { %825 = vsyncpa [#allocation3 + $0x1], 1 }
 0x3b4   :  { %826 = vsyncpa [#allocation6], 1 }
 0x3b5   :  { %827 = vsyncpa [#allocation4], 1 }
 0x3b6   :  { %829 = vsyncpa [#allocation4 + $0x1], 1 }

</bundles_post_ra>
